<compile_context>
chip_gen: v7x
topology: tpu7x:2x2x1
jax: 0.10.0
libtpu: 0.0.40
codegen_flags: <defaults>
</compile_context>

<pallas_src>
import functools

import jax
import jax.numpy as jnp
from jax.experimental import pallas as pl
from jax.experimental.pallas import tpu as pltpu

NUM_CLS = 8                      # K (demo value)
MAX_TILE_T = 32768               # lane-axis tile cap (multiple of 128); safe v5e..v7x
TARGET_STEP_ELEMS = 512 * 1024   # ~2 MiB f32 / ~1 MiB bf16 of logits per grid step


def _cdiv(a, b):
    return -(-a // b)


def _choose_tiling(B, K, T, max_tile_t):
    """Pick (b_blk, tile_t) so one grid step covers ~TARGET_STEP_ELEMS logit elems."""
    # Lane tile: multiple of 128 (or the full T), capped by max_tile_t and budget.
    lane_cap = max(128, min(max_tile_t, (TARGET_STEP_ELEMS // max(K, 1)) // 128 * 128))
    tile_t = T if T <= lane_cap else lane_cap
    num_t = _cdiv(T, tile_t)
    # Batch block: fill the remaining element budget (keeps the kernel HBM-bound
    # for AFSD-style shapes with many rows and modest T).
    b_blk = max(1, min(B, TARGET_STEP_ELEMS // (K * tile_t)))
    num_b = _cdiv(B, b_blk)
    # Guarantee >= 2 grid steps on a "parallel" axis when possible (v7x has two
    # TensorCores sharing HBM; one extra step costs ~0.35us on v5e/v6e).
    if num_b * num_t == 1:
        if B >= 2:
            b_blk = _cdiv(B, 2)
            num_b = _cdiv(B, b_blk)
        elif T >= 256:
            tile_t = _cdiv(_cdiv(T, 2), 128) * 128
            num_t = _cdiv(T, tile_t)
    return b_blk, tile_t, num_b, num_t


def _evidence_loss_kernel(logit_ref, target_ref, out_ref, *,
                          num_cls, b_total, t_total, b_blk, tile_t,
                          needs_b_tail, needs_t_tail):
    """One grid step: a (b_blk, K, tile_t) slab -> one lane-dense (1,128) partial."""
    logit = logit_ref[...].astype(jnp.float32)       # (b_blk, K, tile_t), in-kernel upcast
    tgt = target_ref[...].astype(jnp.int32)          # (b_blk, 1, tile_t)

    # one-hot(target) via class-axis (sublane) iota vs the broadcast target row
    class_ids = jax.lax.broadcasted_iota(jnp.int32, logit.shape, 1)
    y = class_ids == tgt                             # (b_blk, K, tile_t) bool

    # evidence == 'exp': alpha = exp(clamp(logit, -10, 10)) + 1
    alpha = jnp.exp(jnp.clip(logit, -10.0, 10.0)) + 1.0
    S = jnp.sum(alpha, axis=1, keepdims=True)                          # (b_blk,1,tile_t)
    alpha_t = jnp.sum(jnp.where(y, alpha, 0.0), axis=1, keepdims=True)

    # Out-of-range targets contribute zero loss (ignore_index semantics);
    # PyTorch's one-hot indexing would raise instead.
    valid = (tgt >= 0) & (tgt < num_cls)
    if needs_t_tail:   # only emitted when T % tile_t != 0 (ragged last lane tile)
        col = (jax.lax.broadcasted_iota(jnp.int32, tgt.shape, 2)
               + pl.program_id(1) * tile_t)
        valid &= col < t_total
    if needs_b_tail:   # only emitted when B % b_blk != 0 (ragged last row block)
        row = (jax.lax.broadcasted_iota(jnp.int32, tgt.shape, 0)
               + pl.program_id(0) * b_blk)
        valid &= row < b_total

    # edl_loss (func=log): per-column loss = log(S) - log(alpha_target)
    per_col = jnp.where(valid, jnp.log(S) - jnp.log(alpha_t), 0.0)
    partial = jnp.sum(per_col)

    # masked single-element store into a lane-dense (1,128) output row
    lane = jax.lax.broadcasted_iota(jnp.int32, (1, 128), 1)
    out_ref[0, 0] = jnp.where(lane == 0, partial, 0.0)


@functools.partial(jax.jit, static_argnames=("num_cls", "max_tile_t"))
def evidence_loss(logit, target, num_cls=NUM_CLS, max_tile_t=MAX_TILE_T):
    """Pallas EvidenceLoss.forward (loss_type='log', evidence='exp', sum-reduced).

    logit:  (B, K, *spatial) or (N, K) float (f32/bf16 stream through natively)
    target: (B, *spatial)    or (N,)   int   (int8/int16/int32 stream natively)
    returns scalar total_loss (float32)
    """
    # Keep native dtypes on the HBM side; upcasts happen per-tile in the kernel.
    if not jnp.issubdtype(logit.dtype, jnp.floating):
        logit = logit.astype(jnp.float32)
    if (not jnp.issubdtype(target.dtype, jnp.integer)) or target.dtype.itemsize > 4:
        target = target.astype(jnp.int32)

    if logit.ndim == 2:
        # (N, K) row-major -> (1, K, N) class-major layout.
        # NOTE: this transpose is a full HBM relayout of the logits; producers
        # should emit class-major (B, K, T) directly to avoid it.
        # TODO(synk): accept a producer-provided class-major 2-D layout to skip this.
        logit = jnp.transpose(logit, (1, 0))[None]
        target = target.reshape(1, -1)
    else:
        B, K = logit.shape[0], logit.shape[1]
        logit = logit.reshape(B, K, -1)      # flatten trailing spatial dims (free)
        target = target.reshape(B, -1)

    B, K, T = logit.shape
    assert K == num_cls
    assert target.shape == (B, T)

    b_blk, tile_t, num_b, num_t = _choose_tiling(B, K, T, max_tile_t)
    target3 = target.reshape(B, 1, T)

    kernel = functools.partial(
        _evidence_loss_kernel,
        num_cls=num_cls, b_total=B, t_total=T, b_blk=b_blk, tile_t=tile_t,
        needs_b_tail=(B % b_blk) != 0, needs_t_tail=(T % tile_t) != 0)

    partials = pl.pallas_call(
        kernel,
        out_shape=jax.ShapeDtypeStruct((num_b, num_t, 1, 128), jnp.float32),
        grid_spec=pltpu.PrefetchScalarGridSpec(
            num_scalar_prefetch=0,
            grid=(num_b, num_t),
            in_specs=[
                pl.BlockSpec((b_blk, K, tile_t), lambda b, t: (b, 0, t)),
                pl.BlockSpec((b_blk, 1, tile_t), lambda b, t: (b, 0, t)),
            ],
            out_specs=pl.BlockSpec((1, 1, 1, 128), lambda b, t: (b, t, 0, 0)),
        ),
        compiler_params=pltpu.CompilerParams(
            dimension_semantics=("parallel", "parallel"),
            vmem_limit_bytes=32 * 1024 * 1024),
    )(logit, target3)

    # Per-step partials (only lane 0 nonzero, rest explicitly zeroed); final
    # reduce over (num_b * num_t * 128) scalars is trivial in XLA.
    return jnp.sum(partials)


def _reference_loss(logit, target, num_cls=NUM_CLS):
    """Pure-JAX reference mirroring the PyTorch module semantics."""
    logit = logit.astype(jnp.float32)
    if logit.ndim > 2:
        B, K = logit.shape[0], logit.shape[1]
        logit = logit.reshape(B, K, -1)
        logit = jnp.transpose(logit, (0, 2, 1)).reshape(-1, K)
    target = target.reshape(-1).astype(jnp.int32)
    y = jnp.eye(num_cls, dtype=jnp.float32)[target]
    alpha = jnp.exp(jnp.clip(logit, -10.0, 10.0)) + 1.0
    S = jnp.sum(alpha, axis=1, keepdims=True)
    return jnp.sum(jnp.sum(y * (jnp.log(S) - jnp.log(alpha)), axis=1))


if __name__ == "__main__":
    key = jax.random.PRNGKey(0)
    k1, k2, k3, k4 = jax.random.split(key, 4)

    # conv-style (B, C=num_cls, T) logits; producer emits narrow int8 targets
    B, K, T = 2, NUM_CLS, 256
    logit = jax.random.normal(k1, (B, K, T), dtype=jnp.float32) * 2.0
    target = jax.random.randint(k2, (B, T), 0, K, dtype=jnp.int8)
    ref = _reference_loss(logit, target)

    # default tiling: grid (2, 1), b_blk = 1 (>= 2 parallel steps for v7x)
    out = evidence_loss(logit, target)
    jax.block_until_ready(out)
    assert jnp.allclose(out, ref, rtol=1e-5, atol=1e-3), (out, ref)

    # multi lane-tile path: grid (1, 2), b_blk = 2
    out2 = evidence_loss(logit, target, max_tile_t=128)
    jax.block_until_ready(out2)
    assert jnp.allclose(out2, ref, rtol=1e-5, atol=1e-3), (out2, ref)

    # bf16 logits, int32 targets, ragged B block and non-128-aligned T
    B3, T3 = 3, 300
    logit3 = (jax.random.normal(k3, (B3, K, T3), dtype=jnp.float32) * 2.0
              ).astype(jnp.bfloat16)
    target3 = jax.random.randint(k4, (B3, T3), 0, K, dtype=jnp.int32)
    ref3 = _reference_loss(logit3, target3)
    out3 = evidence_loss(logit3, target3)
    jax.block_until_ready(out3)
    assert jnp.allclose(out3, ref3, rtol=1e-5, atol=1e-3), (out3, ref3)

    # TODO(synk): mse/digamma losses, GHM/IBM reweighting and iou_calib branches
    # of the PyTorch module are config paths not taken here and are not modeled.
    print("KERNEL_OK")
</pallas_src>

<mosaic_0001>
module attributes {stable_mosaic.version = 11 : i64} {
  func.func @_evidence_loss_kernel(%arg0: i32, %arg1: i32, %arg2: memref<1x8x256xf32, #tpu.memory_space<vmem>>, %arg3: memref<1x1x256xi8, #tpu.memory_space<vmem>>, %arg4: memref<1x1x1x128xf32, #tpu.memory_space<vmem>>) attributes {dimension_semantics = [#tpu.dimension_semantics<parallel>, #tpu.dimension_semantics<parallel>], iteration_bounds = array<i64: 2, 1>, scalar_prefetch = 0 : i64, scratch_operands = 0 : i64, tpu.core_type = #tpu.core_type<tc>, window_params = [{transform_indices = @transform_0, window_bounds = array<i64: 1, 8, 256>}, {transform_indices = @transform_1, window_bounds = array<i64: 1, 1, 256>}, {transform_indices = @transform_2, window_bounds = array<i64: 1, 1, 1, 128>}]} {
    %c0 = arith.constant 0 : index
    %c0_0 = arith.constant 0 : index
    %c0_1 = arith.constant 0 : index
    %0 = vector.load %arg2[%c0, %c0_0, %c0_1] : memref<1x8x256xf32, #tpu.memory_space<vmem>>, vector<1x8x256xf32>
    %c0_2 = arith.constant 0 : index
    %c0_3 = arith.constant 0 : index
    %c0_4 = arith.constant 0 : index
    %1 = vector.load %arg3[%c0_2, %c0_3, %c0_4] : memref<1x1x256xi8, #tpu.memory_space<vmem>>, vector<1x1x256xi8>
    %2 = arith.extsi %1 : vector<1x1x256xi8> to vector<1x1x256xi32>
    %3 = tpu.iota {dimensions = array<i32: 1>} : vector<1x8x256xi32>
    %4 = vector.broadcast %2 : vector<1x1x256xi32> to vector<1x8x256xi32>
    %5 = arith.cmpi eq, %3, %4 : vector<1x8x256xi32>
    %cst = arith.constant -1.000000e+01 : f32
    %cst_5 = arith.constant 1.000000e+01 : f32
    %6 = vector.broadcast %cst : f32 to vector<1x8x256xf32>
    %7 = arith.maximumf %6, %0 : vector<1x8x256xf32>
    %8 = vector.broadcast %cst_5 : f32 to vector<1x8x256xf32>
    %9 = arith.minimumf %8, %7 : vector<1x8x256xf32>
    %10 = math.exp %9 : vector<1x8x256xf32>
    %cst_6 = arith.constant 1.000000e+00 : f32
    %11 = vector.broadcast %cst_6 : f32 to vector<1x8x256xf32>
    %12 = arith.addf %10, %11 : vector<1x8x256xf32>
    %cst_7 = arith.constant dense<0.000000e+00> : vector<1x256xf32>
    %13 = vector.multi_reduction <add>, %12, %cst_7 [1] : vector<1x8x256xf32> to vector<1x256xf32>
    %14 = vector.shape_cast %13 : vector<1x256xf32> to vector<1x1x256xf32>
    %cst_8 = arith.constant 0.000000e+00 : f32
    %15 = vector.broadcast %cst_8 : f32 to vector<1x8x256xf32>
    %16 = arith.select %5, %12, %15 : vector<1x8x256xi1>, vector<1x8x256xf32>
    %cst_9 = arith.constant dense<0.000000e+00> : vector<1x256xf32>
    %17 = vector.multi_reduction <add>, %16, %cst_9 [1] : vector<1x8x256xf32> to vector<1x256xf32>
    %18 = vector.shape_cast %17 : vector<1x256xf32> to vector<1x1x256xf32>
    %c0_i32 = arith.constant 0 : i32
    %19 = vector.broadcast %c0_i32 : i32 to vector<1x1x256xi32>
    %20 = arith.cmpi sge, %2, %19 : vector<1x1x256xi32>
    %c8_i32 = arith.constant 8 : i32
    %21 = vector.broadcast %c8_i32 : i32 to vector<1x1x256xi32>
    %22 = arith.cmpi slt, %2, %21 : vector<1x1x256xi32>
    %23 = arith.andi %20, %22 : vector<1x1x256xi1>
    %24 = math.log %14 : vector<1x1x256xf32>
    %25 = math.log %18 : vector<1x1x256xf32>
    %26 = arith.subf %24, %25 : vector<1x1x256xf32>
    %cst_10 = arith.constant 0.000000e+00 : f32
    %27 = vector.broadcast %cst_10 : f32 to vector<1x1x256xf32>
    %28 = arith.select %23, %26, %27 : vector<1x1x256xi1>, vector<1x1x256xf32>
    %29 = vector.shape_cast %28 : vector<1x1x256xf32> to vector<1x1x1x256xf32>
    %cst_11 = arith.constant dense<0.000000e+00> : vector<1xf32>
    %30 = vector.multi_reduction <add>, %29, %cst_11 [1, 2, 3] : vector<1x1x1x256xf32> to vector<1xf32>
    %31 = vector.shape_cast %30 : vector<1xf32> to vector<1x1x1x1xf32>
    %32 = vector.extract %31[0, 0, 0, 0] : f32 from vector<1x1x1x1xf32>
    %33 = tpu.iota {dimensions = array<i32: 1>} : vector<1x128xi32>
    %c0_i32_12 = arith.constant 0 : i32
    %34 = vector.broadcast %c0_i32_12 : i32 to vector<1x128xi32>
    %35 = arith.cmpi eq, %33, %34 : vector<1x128xi32>
    %cst_13 = arith.constant 0.000000e+00 : f32
    %36 = vector.broadcast %32 : f32 to vector<1x128xf32>
    %37 = vector.broadcast %cst_13 : f32 to vector<1x128xf32>
    %38 = arith.select %35, %36, %37 : vector<1x128xi1>, vector<1x128xf32>
    %c0_14 = arith.constant 0 : index
    %c0_15 = arith.constant 0 : index
    %c0_16 = arith.constant 0 : index
    %c0_17 = arith.constant 0 : index
    %39 = vector.load %arg4[%c0_14, %c0_15, %c0_16, %c0_17] : memref<1x1x1x128xf32, #tpu.memory_space<vmem>>, vector<1x1x1x128xf32>
    %40 = vector.shape_cast %39 : vector<1x1x1x128xf32> to vector<1x128xf32>
    %41 = vector.shape_cast %38 : vector<1x128xf32> to vector<1x1x1x128xf32>
    tpu.vector_store %arg4[%c0_14, %c0_15, %c0_16, %c0_17], %41 {strides = array<i32>} : memref<1x1x1x128xf32, #tpu.memory_space<vmem>>, vector<1x1x1x128xf32>,
    return
  }
  func.func @transform_0(%arg0: i32, %arg1: i32) -> (i32, i32, i32) {
    %c0_i32 = arith.constant 0 : i32
    %c0_i32_0 = arith.constant 0 : i32
    return %arg0, %c0_i32, %arg1 : i32, i32, i32
  }
  func.func @transform_1(%arg0: i32, %arg1: i32) -> (i32, i32, i32) {
    %c0_i32 = arith.constant 0 : i32
    %c0_i32_0 = arith.constant 0 : i32
    return %arg0, %c0_i32, %arg1 : i32, i32, i32
  }
  func.func @transform_2(%arg0: i32, %arg1: i32) -> (i32, i32, i32, i32) {
    %c0_i32 = arith.constant 0 : i32
    %c0_i32_0 = arith.constant 0 : i32
    %c0_i32_1 = arith.constant 0 : i32
    return %arg0, %arg1, %c0_i32, %c0_i32_0 : i32, i32, i32, i32
  }
}

</mosaic_0001>

<bundles_post_ra>
// kernel: evidence_loss.1
= control target key start
LH: loop header
LB: loop body
LE: loop exit
PB: predicated region body
PF: predicated region fallthrough
CT: control target
= control target key end

     0   :  { %7 = vsyncpa [#allocation3], 0  ;;  %s747_s0 = inlined_call_operand.hbm [shape: f32[2,8,256], index: 0, kind: input, shape index: {}]   ;;  %s748_s1 = inlined_call_operand.vmem [shape: s8[2,1,256], index: 1, kind: input, shape index: {}]   ;;  %s749_s2 = inlined_call_operand.vmem [shape: f32[2,1,1,128], index: 2, kind: output, shape index: {}]  }
   0x1   :  { %9 = vsyncpa [#allocation3 + $0x1], 0  ;;  %s601_s9 = smov 0   ;;  %s603_s10 = smov 0  }
   0x2   :  { %s605_s11 = smov 0   ;;  %s607_s12 = smov 0  }
   0x3   :  { %s609_s13 = smov 0   ;;  %s611_s14 = smov 0  }
   0x4 LB: > { %s419_s15 = sadd.s32 4294967295, %s583_s14   ;;  %s27_s16 = sadd.s32 1, %s579_s13  ;;  %s583_s14 = sphi %s611_s14, %s15_s14   ;;  %s579_s13 = sphi %s609_s13, %s759_s13   ;;  %s575_s12 = sphi %s607_s12, %s758_s12   ;;  %s571_s11 = sphi %s605_s11, %s757_s11   ;;  %s567_s10 = sphi %s603_s10, %s756_s10   ;;  %s563_s9 = sphi %s601_s9, %s755_s9  }
   0x5   : > { %p29_p0 = scmp.ge.s32.totalorder %s27_s16, 2  ;;  %s36_s17 = sadd.s32 1, %s571_s11 }
   0x6   : > { %p43_p1 = scmp.ne.s32.totalorder %s571_s11, %s567_s10  ;;  %p44_p2 = scmp.eq.s32.totalorder %s583_s14, 0 }
   0x7   : > { %s761_s16 = smov (%p29_p0, %s27_s16), 0  ;;  %p49_p4 = scmp.ne.s32.totalorder %s567_s10, %s563_s9 }
   0x8   : > { %p637_p3 = por %p44_p2, %p43_p1  ;;  %s31_s19 = ssub.s32 %s579_s13, %s761_s16 }
   0x9   : > { %p50_p5 = scmp.eq.s32.totalorder %s419_s15, 0  ;;  %p34_p6 = scmp.eq.s32.totalorder %s31_s19, 0 }
   0xa   : > { %p442_p8 = scmp.lt.s32.totalorder %s583_s14, 2  ;;  %s129_s22 = sand.u32 1, %s571_s11  }
   0xb   : > { %p644_p7 = por %p50_p5, %p49_p4  ;;  %s433_s23 = sshll.u32 %s579_s13, 8 }
   0xc   : > { %s650_s21 = scalar_select %p34_p6, %s571_s11, %s36_s17  }
   0xd   : > { %s423_s24 = sshll.u32 %s129_s22, 4  ;;  %s657_s27 = scalar_lea.hbm %s747_s0, %s433_s23 }
   0xe   : > { %s133_s28 = scalar_lea.vmem [#allocation2], %s423_s24  ;;  %p661_p9 = pnand %p442_p8, %p637_p3 }
   0xf   : > { %s143_s29 = sshll.u32 %s133_s28, 4  ;;  %s130_s3 = scalar_lea.sflag [#allocation3], %s129_s22  ;;  %s665_s29 = int_to_ptr.vmem [resolvable:$true] %s143_s29 }
  0x10   : > { %s503_s4 = scalar_lea.hbm %s657_s27, 256  ;;  %p505_p13 = pneg %p661_p9 }
  0x11   : > { %p504_p12 = scmp.ne.s32.totalorder %s657_s27, %s503_s4  ;;  %s508_s7 = scalar_lea.hbm %s747_s0, 512 }
  0x12   : > { %p509_p2 = scmp.lt.u32.totalorder %s657_s27, %s747_s0  ;;  %p510_p3 = scmp.lt.u32.totalorder %s508_s7, %s503_s4 }
  0x13   : > { %p506_p0 = pnand %p505_p13, %p504_p12  ;;  %p512_p5 = scmp.lt.u32.totalorder %s503_s4, %s657_s27 }
  0x14   : > { %p511_p4 = por %p510_p3, %p509_p2 }
  0x15   : > { %p507_p1 = pneg %p506_p0 }
  0x16   : > { %p513_p6 = por %p512_p5, %p511_p4 }
  0x18   : > { %p514_p8 = pnand %p513_p6, %p507_p1 }
  0x1a   : > { %517 = shalt.err (!%p514_p8)
}
  0x1b   : > { %s518_s15 = scalar_lea.vmem %s665_s29, 256  ;;  %s585_s17 = smov [#allocation2]  }
  0x1c   : > { %p519_p12 = scmp.ne.s32.totalorder %s665_s29, %s518_s15  ;;  %s523_s18 = sshll.u32 %s585_s17, 4  ;;  %s524_s18 = int_to_ptr.vmem [resolvable:$false] %s523_s18 }
  0x1d   : > { %s525_s19 = scalar_lea.vmem %s524_s18, 512  ;;  %p526_p11 = scmp.lt.s32.totalorder %s665_s29, %s524_s18 }
  0x1e   : > { %p521_p0 = pnand %p519_p12, %p505_p13  ;;  %p527_p2 = scmp.lt.s32.totalorder %s525_s19, %s518_s15 }
  0x20   : > { %p522_p10 = pneg %p521_p0  ;;  %p528_p3 = por %p527_p2, %p526_p11 }
  0x22   : > { %p529_p4 = pnand %p528_p3, %p522_p10 }
  0x24   : > { %532 = shalt.err (!%p529_p4)
}
  0x25   : > { %441 = dma.hbm_to_vmem [thread:$0]  (!%p661_p9), %s657_s27, 256, %s665_s29, %s130_s3  }
  0x26   : > { %p753_p1 = scmp.lt.s32.totalorder %s583_s14, 3  ;;  %p754_p5 = scmp.ge.s32.totalorder %s583_s14, 1 }
  0x28   : > { %p161_p13 = pnand %p754_p5, %p753_p1 }
  0x29   : > { %s166_s22 = sand.u32 (!%p161_p13), 1, %s567_s10  }
  0x2a   : > { %164 = sbr.rel (%p161_p13) target bundleno = 313 (0x139), region = 28  ;;  %s427_s23 = sshll.u32 (!%p161_p13), %s166_s22, 4 }
  0x2b   : > { %s167_s24 = scalar_lea.sflag (!%p161_p13), [#allocation3], %s166_s22  ;;  %s170_s25 = scalar_lea.vmem (!%p161_p13), [#allocation2], %s427_s23 }
  0x31   : > { %558 = dma.done.wait (%p644_p7), %s167_s24, 256  }
  0x32   : > { %560 = vsyncadd (%p644_p7), %s167_s24, 4294967040  ;;  %p202_p10 = scmp.lt.s32.totalorder %s575_s12, 1  ;;  %v220_v0 = vlaneseq  ;;  %v216_v2 = vld [vmem:[%s170_s25] sm:$0xff]  ;;  %v217_v3 = vld [vmem:[%s170_s25 + $0x8] sm:$0xff]  ;;  %vm305_vm5 = vcmask 1040384  }
  0x33   : > { %v429_v5 = vclamps-f32 %v216_v2, 10.0  ;;  %v430_v6 = vclamps-f32 %v217_v3, 10.0 }
  0x34   : > { %s763_s12 = smov (!%p202_p10, %s575_s12), 1  ;;  %v712_v1 = vshrl.u32 %v220_v0, 7 }
  0x35   : > { %s428_s26 = sshll.u32 %s763_s12, 1  ;;  %v244_v9 = vmul.f32 1.442695, %v429_v5  ;;  %v246_v10 = vmul.f32 1.442695, %v430_v6  ;;  %s215_s3 = scalar_lea.vmem %s749_s2, %s763_s12 }
  0x36   : > { %s208_s29 = scalar_lea.vmem %s748_s1, %s428_s26  ;;  %v715_v8 = vsub.s32 0, %v712_v1  ;;  %v228_v11 = vsub.s32 4, %v712_v1 }
  0x37   : > { %v218_v4 = vld [vmem:[%s208_s29] sm:$0x3]  ;;  %491 = vpow2.f32 %v244_v9 }
  0x38   : > { %v219_v7 = vunpack.c.0.s8 %v218_v4  ;;  %493 = vpow2.f32 %v246_v10 }
  0x3a   : > { %v225_v12 = vrot.slane %v219_v7, %v715_v8  ;;  %v229_v13 = vrot.slane %v219_v7, %v228_v11  ;;  %vm276_vm2 = vcmp.ge.s32.totalorder %v219_v7, 0  ;;  %vm277_vm3 = vcmp.lt.s32.totalorder %v219_v7, 8 }
  0x3b   : > { %vm278_vm4 = vmand %vm276_vm2, %vm277_vm3  ;;  %v319_v7 = vand.u32 127, %v220_v0 }
  0x3c   : > { %v233_v14 = vrot.slane %v225_v12, %v715_v8  ;;  %v237_v15 = vrot.slane %v229_v13, %v715_v8 }
  0x3d   : > { %vm320_vm6 = vcmp.eq.s32.totalorder %v319_v7, 0 }
  0x3e   : > { %vm238_vm0 = vcmp.eq.s32.totalorder %v712_v1, %v233_v14  ;;  %vm239_vm1 = vcmp.eq.s32.totalorder %v712_v1, %v237_v15 }
  0x41   : > { %v492_v16 = vpop.eup %491 }
  0x42   : > { %v494_v17 = vpop.eup %493  ;;  %v248_v18 = vadd.f32 1.0, %v492_v16 }
  0x43   : > { %v249_v19 = vadd.f32 1.0, %v494_v17 }
  0x44   : > { %v250_v20 = vrot.slane %v248_v18, 4  ;;  %v262_v21 = vsel %vm238_vm0, %v248_v18, 0.0 }
  0x45   : > { %v256_v22 = vrot.slane %v249_v19, 4  ;;  %v263_v23 = vsel %vm239_vm1, %v249_v19, 0.0  ;;  %v264_v24 = vrot.slane %v262_v21, 4 }
  0x46   : > { %v251_v25 = vadd.f32 %v250_v20, %v248_v18  ;;  %v270_v26 = vrot.slane %v263_v23, 4 }
  0x47   : > { %v257_v27 = vadd.f32 %v256_v22, %v249_v19  ;;  %v265_v28 = vadd.f32 %v264_v24, %v262_v21 }
  0x48   : > { %v252_v29 = vrot.slane %v251_v25, 2  ;;  %v271_v30 = vadd.f32 %v270_v26, %v263_v23 }
  0x49   : > { %v258_v31 = vrot.slane %v257_v27, 2  ;;  %v266_v32 = vrot.slane %v265_v28, 2 }
  0x4a   : > { %v253_v33 = vadd.f32 %v252_v29, %v251_v25  ;;  %v272_v34 = vrot.slane %v271_v30, 2 }
  0x4b   : > { %v259_v35 = vadd.f32 %v258_v31, %v257_v27  ;;  %v267_v36 = vadd.f32 %v266_v32, %v265_v28 }
  0x4c   : > { %v254_v37 = vrot.slane %v253_v33, 1  ;;  %v273_v38 = vadd.f32 %v272_v34, %v271_v30 }
  0x4d   : > { %v260_v39 = vrot.slane %v259_v35, 1  ;;  %v268_v40 = vrot.slane %v267_v36, 1 }
  0x4e   : > { %v255_v41 = vadd.f32 %v254_v37, %v253_v33  ;;  %v274_v42 = vrot.slane %v273_v38, 1 }
  0x4f   : > { %v261_v43 = vadd.f32 %v260_v39, %v259_v35  ;;  %v269_v44 = vadd.f32 %v268_v40, %v267_v36 }
  0x50   : > { %v275_v45 = vadd.f32 %v274_v42, %v273_v38  ;;  %495 = vlog2.f32 %v255_v41 }
  0x51   : > { %497 = vlog2.f32 %v261_v43 }
  0x52   : > { %499 = vlog2.f32 %v269_v44 }
  0x53   : > { %501 = vlog2.f32 %v275_v45 }
  0x5a   : > { %v496_v46 = vpop.eup %495 }
  0x5b   : > { %v498_v47 = vpop.eup %497  ;;  %v280_v48 = vmul.f32 0.6931472, %v496_v46 }
  0x5c   : > { %v500_v49 = vpop.eup %499  ;;  %v282_v50 = vmul.f32 0.6931472, %v498_v47 }
  0x5d   : > { %v502_v51 = vpop.eup %501  ;;  %v284_v52 = vmul.f32 0.6931472, %v500_v49 }
  0x5e   : > { %v286_v53 = vmul.f32 0.6931472, %v502_v51 }
  0x5f   : > { %v287_v54 = vsub.f32 %v280_v48, %v284_v52 }
  0x60   : > { %v288_v55 = vsub.f32 %v282_v50, %v286_v53 }
  0x62   : > { %v291_v56 = vcombine.low %v287_v54, %v288_v55 }
  0x64   : > { %v293_v57 = vsel %vm278_vm4, %v291_v56, 0.0 }
  0x65   : > { %v298_v58 = vrot.slane %v293_v57, %v715_v8  ;;  %v302_v59 = vrot.slane %v293_v57, %v228_v11 }
  0x67   : > { %v306_v60 = vsel %vm305_vm5, %v298_v58, 0.0  ;;  %v307_v61 = vsel %vm305_vm5, %v302_v59, 0.0 }
  0x68   : > { %v308_v62 = vadd.f32 %v307_v61, %v306_v60 }
  0x6a   : > { %309 = vadd.xlane.f32.xlu0 %v308_v62 }
  0xf7   : > { %v310_v63 = vpop.xlane.xlu0 %309 }
  0xf8   : > { %v311_v1 = vrot.slane %v310_v63, 4 }
  0xfa   : > { %v312_v2 = vadd.f32 %v311_v1, %v310_v63 }
  0xfc   : > { %v313_v3 = vrot.slane %v312_v2, 2 }
  0xfe   : > { %v314_v4 = vadd.f32 %v313_v3, %v312_v2 }
 0x100   : > { %v315_v5 = vrot.slane %v314_v4, 1 }
 0x102   : > { %v316_v6 = vadd.f32 %v315_v5, %v314_v4 }
 0x104   : > { %434 = vpush %v316_v6 }
 0x135   : > { %s435_s4 = spop %434 }
 0x136   : > { %v321_v8 = vstv %s435_s4 }
 0x137   : > { %v322_v9 = vsel %vm320_vm6, %v321_v8, 0.0 }
 0x138   : > { %323 = vst [vmem:[%s215_s3] sm:$0x1] %v322_v9 }
 0x139 PF: > { %s15_s14 = sadd.s32 1, %s583_s14   ;;  %s755_s9 = smov %s567_s10 }
 0x13a   : > { %p12_p7 = scmp.ge.s32.totalorder %s15_s14, 4   ;;  %s756_s10 = smov %s571_s11 }
 0x13b   : > { %s757_s11 = smov %s650_s21  ;;  %s758_s12 = smov %s579_s13 }
 0x13c   : > { %s759_s13 = smov %s761_s16  ;;  %14 = sbr.rel (!%p12_p7) target bundleno = 4 (0x4), region = 71 }
 0x143   :  { %347 = vsyncpa [#allocation3], 1 }
 0x144   :  { %349 = vsyncpa [#allocation3 + $0x1], 1 }

</bundles_post_ra>
